<compile_context>
chip_gen: v7x
topology: tpu7x:2x2x1
jax: 0.10.0
libtpu: 0.0.40
codegen_flags: <defaults>
</compile_context>

<pallas_src>
import jax
import jax.numpy as jnp
from jax.experimental import pallas as pl
from jax.experimental.pallas import tpu as pltpu  # noqa: F401  (TPU backend import)

MIN_LANES = 128


def _padded_lanes(n_in):
    # input length + 1 (for the folded bias), rounded up to a multiple of 128
    return max(MIN_LANES, ((n_in + 1 + MIN_LANES - 1) // MIN_LANES) * MIN_LANES)


def gobi_kernel(xw_ref, o_ref):
    # xw_ref: (2, L) f32 in VMEM.  row 0 = [x, 1, 0...], row 1 = [w, b, 0...]
    # o_ref:  (1, 1) f32 in VMEM
    prod = xw_ref[0:1, :] * xw_ref[1:2, :]          # VPU elementwise (one vreg per 128 lanes)
    y = jax.nn.sigmoid(jnp.sum(prod))               # XLU cross-lane reduce + EUP sigmoid
    o_ref[...] = jnp.full((1, 1), y, dtype=o_ref.dtype)


def prepare_gobi_params(weight, bias):
    """Precompute the padded weight+bias row once (call at init, not per forward).

    weight: (1, n_in) f32, bias: (1,) f32  ->  (L,) f32 row with bias folded in.
    """
    n_in = weight.shape[1]
    lanes = _padded_lanes(n_in)
    wb = jnp.concatenate(
        [weight.reshape(-1).astype(jnp.float32), bias.reshape(-1).astype(jnp.float32)]
    )
    return jnp.pad(wb, (0, lanes - (n_in + 1)))


def gobi_forward(d, a, s, w_row):
    """Pallas implementation of GOBI.forward(d, a, s).

    d, a: any shape flattening to n_feats; s: any shape flattening to 7.
    w_row: precomputed (L,) row from prepare_gobi_params.
    returns: (1,) f32
    """
    lanes = w_row.shape[0]

    # Build the feature row: [d, a, s, 1.0] then zero-pad to the lane width.
    x_row = jnp.concatenate(
        [
            d.reshape(-1).astype(jnp.float32),
            a.reshape(-1).astype(jnp.float32),
            s.reshape(-1).astype(jnp.float32),
            jnp.ones((1,), jnp.float32),            # pairs with the folded bias
        ]
    )
    x_row = jnp.pad(x_row, (0, lanes - x_row.shape[0]))

    # One lane-dense (2, L) f32 slab: row 0 = features, row 1 = weights+bias.
    xw = jnp.stack([x_row, w_row], axis=0)

    out = pl.pallas_call(
        gobi_kernel,
        out_shape=jax.ShapeDtypeStruct((1, 1), jnp.float32),
        in_specs=[pl.BlockSpec((2, lanes), lambda: (0, 0))],
        out_specs=pl.BlockSpec((1, 1), lambda: (0, 0)),
    )(xw)

    return out.reshape(1)  # matches PyTorch output shape (1,)


if __name__ == "__main__":
    feats = 16
    n_apps = 7
    n_in = feats * 2 + n_apps

    key = jax.random.PRNGKey(0)
    kd, ka, ks, kw, kb = jax.random.split(key, 5)

    # Deterministic "parameters" (synthetic; PyTorch init not reproduced bit-exactly).
    bound = 1.0 / (n_in ** 0.5)
    weight = jax.random.uniform(kw, (1, n_in), jnp.float32, -bound, bound)
    bias = jax.random.uniform(kb, (1,), jnp.float32, -bound, bound)

    # Precompute the padded weight+bias row once (init-time, not per call).
    w_row = prepare_gobi_params(weight, bias)

    # Example inputs (any shapes flattening to feats / feats / n_apps).
    d = jax.random.normal(kd, (feats,), jnp.float32)
    a = jax.random.normal(ka, (feats,), jnp.float32)
    s = jax.random.normal(ks, (n_apps,), jnp.float32)

    # jit so the tiny wrapper ops (concat/pad/stack) fuse around the custom call.
    fwd = jax.jit(gobi_forward)
    y = fwd(d, a, s, w_row)
    y = jax.block_until_ready(y)

    # Pure-JAX reference check.
    x = jnp.concatenate([d.reshape(-1), a.reshape(-1), s.reshape(-1)])
    y_ref = jax.nn.sigmoid(weight @ x + bias)
    assert y.shape == (1,)
    assert jnp.allclose(y, y_ref, atol=1e-6), (y, y_ref)

    print("KERNEL_OK")
</pallas_src>

<mosaic_0001>
module attributes {stable_mosaic.version = 11 : i64} {
  func.func @gobi_kernel(%arg0: memref<2x128xf32, #tpu.memory_space<vmem>>, %arg1: memref<1x1xf32, #tpu.memory_space<vmem>>) attributes {dimension_semantics = [], scalar_prefetch = 0 : i64, scratch_operands = 0 : i64, tpu.core_type = #tpu.core_type<tc>} {
    %c0 = arith.constant 0 : index
    %c0_0 = arith.constant 0 : index
    %0 = vector.load %arg0[%c0, %c0_0] : memref<2x128xf32, #tpu.memory_space<vmem>>, vector<1x128xf32>
    %c1 = arith.constant 1 : index
    %c0_1 = arith.constant 0 : index
    %1 = vector.load %arg0[%c1, %c0_1] : memref<2x128xf32, #tpu.memory_space<vmem>>, vector<1x128xf32>
    %2 = arith.mulf %0, %1 : vector<1x128xf32>
    %3 = vector.shape_cast %2 : vector<1x128xf32> to vector<1x1x128xf32>
    %cst = arith.constant dense<0.000000e+00> : vector<1xf32>
    %4 = vector.multi_reduction <add>, %3, %cst [1, 2] : vector<1x1x128xf32> to vector<1xf32>
    %5 = vector.shape_cast %4 : vector<1xf32> to vector<1x1x1xf32>
    %6 = vector.extract %5[0, 0, 0] : f32 from vector<1x1x1xf32>
    %7 = arith.negf %6 : f32
    %8 = math.exp %7 : f32
    %cst_2 = arith.constant 1.000000e+00 : f32
    %9 = arith.addf %cst_2, %8 : f32
    %10 = arith.divf %cst_2, %9 : f32
    %11 = vector.broadcast %10 : f32 to vector<1x1xf32>
    %c0_3 = arith.constant 0 : index
    %c0_4 = arith.constant 0 : index
    %12 = vector.load %arg1[%c0_3, %c0_4] : memref<1x1xf32, #tpu.memory_space<vmem>>, vector<1x1xf32>
    tpu.vector_store %arg1[%c0_3, %c0_4], %11 {strides = array<i32>} : memref<1x1xf32, #tpu.memory_space<vmem>>, vector<1x1xf32>,
    return
  }
}

</mosaic_0001>

<bundles_post_ra>
// kernel: gobi_forward.1
= control target key start
LH: loop header
LB: loop body
LE: loop exit
PB: predicated region body
PF: predicated region fallthrough
CT: control target
= control target key end

     0   :  { %vm12_vm0 = vcmask 1040384   ;;  %s113_s0 = inlined_call_operand.vmem [shape: f32[2,128], index: 0, kind: input, shape index: {}]   ;;  %s114_s1 = inlined_call_operand.hbm [shape: f32[1,1], index: 1, kind: output, shape index: {}]  }
   0x1   :  { %v9_v0 = vld [vmem:[%s113_s0] sm:$0x1]  ;;  %v10_v1 = vld [vmem:[%s113_s0 + $0x1] sm:$0x1] }
   0x2   :  { %v11_v2 = vmul.f32 %v10_v1, %v9_v0 }
   0x3   :  { %6 = vsyncpa [#allocation3], 0  ;;  %s84_s13 = smov [#allocation2]   ;;  %vm33_vm1 = vcmask 0  }
   0x4   :  { %v13_v3 = vsel %vm12_vm0, %v11_v2, 0.0  ;;  %s41_s14 = sshll.u32 %s84_s13, 4  ;;  %s42_s14 = int_to_ptr.vmem [resolvable:$true] %s41_s14 }
   0x5   :  { %14 = vadd.xlane.f32.xlu0 %v13_v3  ;;  %s60_s16 = scalar_lea.vmem %s42_s14, 16  ;;  %s64_s17 = scalar_lea.vmem %s42_s14, 32 }
   0x6   :  { %p61_p0 = scmp.ne.s32.totalorder %s42_s14, %s60_s16  ;;  %p65_p1 = scmp.lt.s32.totalorder %s42_s14, %s42_s14 }
   0x7   :  { %p66_p2 = scmp.lt.s32.totalorder %s64_s17, %s60_s16 }
   0x9   :  { %p67_p3 = por %p66_p2, %p65_p1 }
   0xb   :  { %p68_p4 = pnand %p67_p3, %p61_p0 }
  0x92   :  { %v15_v4 = vpop.xlane.xlu0 %14 }
  0x93   :  { %v16_v5 = vrot.slane %v15_v4, 4 }
  0x95   :  { %v17_v6 = vadd.f32 %v16_v5, %v15_v4 }
  0x97   :  { %v18_v7 = vrot.slane %v17_v6, 2 }
  0x99   :  { %v19_v8 = vadd.f32 %v18_v7, %v17_v6 }
  0x9b   :  { %v20_v9 = vrot.slane %v19_v8, 1 }
  0x9d   :  { %v21_v10 = vadd.f32 %v20_v9, %v19_v8 }
  0x9f   :  { %49 = vpush %v21_v10 }
  0xd0   :  { %s50_s10 = spop %49 }
  0xd1   :  { %s23_s11 = sxor.u32 2147483648, %s50_s10 }
  0xd2   :  { %v24_v11 = vstv %s23_s11 }
  0xd3   :  { %v25_v12 = vmul.f32 1.442695, %v24_v11 }
  0xd5   :  { %56 = vpow2.f32 %v25_v12 }
  0xdf   :  { %v57_v13 = vpop.eup %56 }
  0xe0   :  { %51 = vpush %v57_v13 }
 0x111   :  { %s52_s0 = spop %51 }
 0x112   :  { %s28_s12 = sadd.f32 1.0, %s52_s0 }
 0x114   :  { %v29_v14 = vstv %s28_s12 }
 0x115   :  { %58 = vrcp.f32 %v29_v14 }
 0x11f   :  { %v59_v15 = vpop.eup %58 }
 0x120   :  { %53 = vpush %v59_v15 }
 0x151   :  { %s54_s15 = spop %53 }
 0x152   :  { %v32_v16 = vstv %s54_s15 }
 0x153   :  { %34 = vst.msk [vmem:[#allocation2] sm:$0x1] %vm33_vm1, %v32_v16 }
 0x154   :  { %71 = shalt.err (!%p68_p4)
}
 0x155   :  { %s72_s20 = scalar_lea.hbm %s114_s1, 16 }
 0x156   :  { %p73_p5 = scmp.ne.s32.totalorder %s114_s1, %s72_s20  ;;  %p76_p6 = scmp.lt.u32.totalorder %s72_s20, %s114_s1 }
 0x158   :  { %p78_p7 = pnand %p76_p6, %p73_p5 }
 0x15a   :  { %81 = shalt.err (!%p78_p7)
}
 0x15b   :  { %44 = dma.vmem_to_hbm [thread:$0]  %s42_s14, 16, %s114_s1, [#allocation3]  }
 0x15c   :  { %82 = dma.done.wait [#allocation3], 16  }
 0x15d   :  { %83 = vsyncadd [#allocation3], 4294967280 }
 0x15e   :  { %48 = vsyncpa [#allocation3], 1 }

</bundles_post_ra>
